<compile_context>
chip_gen: v5e
topology: v5e:2x2
jax: 0.10.0
libtpu: 0.0.40
codegen_flags: <defaults>
</compile_context>

<pallas_src>
import functools

import jax
import jax.numpy as jnp
from jax.experimental import pallas as pl
from jax.experimental.pallas import tpu as pltpu


def _gcn_layer_kernel(x_ref, w_ref, b_ref, o_ref, *, acti: bool):
    # MXU matmul with f32 accumulation, bias broadcast, optional ReLU,
    # all fused in the epilogue before the store.
    acc = jnp.dot(x_ref[...], w_ref[...], preferred_element_type=jnp.float32)
    acc = acc + b_ref[...]  # b_ref is (1, TN), broadcasts over rows
    if acti:
        acc = jnp.maximum(acc, 0.0)
    o_ref[...] = acc.astype(o_ref.dtype)


def _round_up(x: int, m: int) -> int:
    return ((x + m - 1) // m) * m


def gcn_layer(x, w, b, acti: bool = True, *, tm: int = 256, tn: int = 256):
    """x: (N, in_dim), w: (in_dim, out_dim), b: (out_dim,) -> (N, out_dim)."""
    N, in_dim = x.shape
    out_dim = w.shape[1]

    # --- wrapper-side padding for lane-dense, aligned tiles -----------------
    # Output lane dim: pad to a multiple of 128 so stores are unmasked.
    out_p = _round_up(out_dim, 128)
    tn = min(tn, out_p)
    # Row dim: tile multiple of 8 sublanes; pad N up to a whole number of tiles.
    tm = min(tm, _round_up(N, 8))
    n_p = _round_up(N, tm)

    x_p = x if n_p == N else jnp.pad(x, ((0, n_p - N), (0, 0)))
    if out_p != out_dim:
        w_p = jnp.pad(w, ((0, 0), (0, out_p - out_dim)))
        b_p = jnp.pad(b, (0, out_p - out_dim))
    else:
        w_p, b_p = w, b
    b2d = b_p.reshape(1, out_p)

    grid = (n_p // tm, out_p // tn)
    kernel = functools.partial(_gcn_layer_kernel, acti=acti)

    out_padded = pl.pallas_call(
        kernel,
        out_shape=jax.ShapeDtypeStruct((n_p, out_p), x.dtype),
        grid_spec=pl.GridSpec(
            grid=grid,
            in_specs=[
                # x tile: rows vary with i, K kept whole (fits VMEM for GCN dims)
                pl.BlockSpec((tm, in_dim), lambda i, j: (i, 0)),
                # w tile: columns vary with j; stays resident across row tiles
                pl.BlockSpec((in_dim, tn), lambda i, j: (0, j)),
                # bias tile
                pl.BlockSpec((1, tn), lambda i, j: (0, j)),
            ],
            out_specs=pl.BlockSpec((tm, tn), lambda i, j: (i, j)),
        ),
        compiler_params=pltpu.CompilerParams(
            # Tiles are fully independent -> parallel on both axes
            # (enables megacore sharding on v7x; harmless on v5e/v6e).
            dimension_semantics=("parallel", "parallel"),
        ),
    )(x_p, w_p, b2d)

    # Strip padding.
    return out_padded[:N, :out_dim]


if __name__ == "__main__":
    # Small shapes consistent with the module: N nodes, in_dim -> out_dim.
    N, in_dim, out_dim = 8, 32, 16
    key = jax.random.PRNGKey(0)
    kx, kw, kb = jax.random.split(key, 3)

    # Parameter init mimicking nn.Linear's uniform(-1/sqrt(in), 1/sqrt(in)).
    bound = 1.0 / (in_dim ** 0.5)
    x = jax.random.normal(kx, (N, in_dim), dtype=jnp.float32)
    w = jax.random.uniform(kw, (in_dim, out_dim), minval=-bound, maxval=bound,
                           dtype=jnp.float32)
    b = jax.random.uniform(kb, (out_dim,), minval=-bound, maxval=bound,
                           dtype=jnp.float32)

    # acti=True path (Linear + ReLU).
    out_relu = gcn_layer(x, w, b, acti=True)
    jax.block_until_ready(out_relu)
    ref_relu = jnp.maximum(x @ w + b, 0.0)
    assert out_relu.shape == (N, out_dim)
    assert jnp.allclose(out_relu, ref_relu, atol=1e-5, rtol=1e-5)

    # acti=False path (plain Linear).
    out_lin = gcn_layer(x, w, b, acti=False)
    jax.block_until_ready(out_lin)
    ref_lin = x @ w + b
    assert out_lin.shape == (N, out_dim)
    assert jnp.allclose(out_lin, ref_lin, atol=1e-5, rtol=1e-5)

    print("KERNEL_OK")
</pallas_src>

<mosaic_0001>
module attributes {stable_mosaic.version = 11 : i64} {
  func.func @_gcn_layer_kernel(%arg0: i32, %arg1: i32, %arg2: memref<8x32xf32, #tpu.memory_space<vmem>>, %arg3: memref<32x128xf32, #tpu.memory_space<vmem>>, %arg4: memref<1x128xf32, #tpu.memory_space<vmem>>, %arg5: memref<8x128xf32, #tpu.memory_space<vmem>>) attributes {dimension_semantics = [#tpu.dimension_semantics<parallel>, #tpu.dimension_semantics<parallel>], iteration_bounds = array<i64: 1, 1>, scalar_prefetch = 0 : i64, scratch_operands = 0 : i64, tpu.core_type = #tpu.core_type<tc>, window_params = [{transform_indices = @transform_0, window_bounds = array<i64: 8, 32>}, {transform_indices = @transform_1, window_bounds = array<i64: 32, 128>}, {transform_indices = @transform_2, window_bounds = array<i64: 1, 128>}, {transform_indices = @transform_3, window_bounds = array<i64: 8, 128>}]} {
    %c0 = arith.constant 0 : index
    %c0_0 = arith.constant 0 : index
    %0 = vector.load %arg2[%c0, %c0_0] : memref<8x32xf32, #tpu.memory_space<vmem>>, vector<8x32xf32>
    %c0_1 = arith.constant 0 : index
    %c0_2 = arith.constant 0 : index
    %1 = vector.load %arg3[%c0_1, %c0_2] : memref<32x128xf32, #tpu.memory_space<vmem>>, vector<32x128xf32>
    %cst = arith.constant dense<0.000000e+00> : vector<8x128xf32>
    %2 = tpu.matmul %0, %1, %cst {dimension_numbers = #tpu.dot_dimension_numbers<[1], [0], [0], [1], [0, 0, 1, 1], [], []>} : vector<8x32xf32>, vector<32x128xf32>, vector<8x128xf32> -> vector<8x128xf32>
    %c0_3 = arith.constant 0 : index
    %c0_4 = arith.constant 0 : index
    %3 = vector.load %arg4[%c0_3, %c0_4] : memref<1x128xf32, #tpu.memory_space<vmem>>, vector<1x128xf32>
    %4 = vector.broadcast %3 : vector<1x128xf32> to vector<8x128xf32>
    %5 = arith.addf %2, %4 : vector<8x128xf32>
    %cst_5 = arith.constant 0.000000e+00 : f32
    %6 = vector.broadcast %cst_5 : f32 to vector<8x128xf32>
    %7 = arith.maximumf %5, %6 : vector<8x128xf32>
    %c0_6 = arith.constant 0 : index
    %c0_7 = arith.constant 0 : index
    %8 = vector.load %arg5[%c0_6, %c0_7] : memref<8x128xf32, #tpu.memory_space<vmem>>, vector<8x128xf32>
    tpu.vector_store %arg5[%c0_6, %c0_7], %7 {strides = array<i32>} : memref<8x128xf32, #tpu.memory_space<vmem>>, vector<8x128xf32>,
    return
  }
  func.func @transform_0(%arg0: i32, %arg1: i32) -> (i32, i32) {
    %c0_i32 = arith.constant 0 : i32
    %c0_i32_0 = arith.constant 0 : i32
    return %arg0, %c0_i32 : i32, i32
  }
  func.func @transform_1(%arg0: i32, %arg1: i32) -> (i32, i32) {
    %c0_i32 = arith.constant 0 : i32
    %c0_i32_0 = arith.constant 0 : i32
    return %c0_i32, %arg1 : i32, i32
  }
  func.func @transform_2(%arg0: i32, %arg1: i32) -> (i32, i32) {
    %c0_i32 = arith.constant 0 : i32
    %c0_i32_0 = arith.constant 0 : i32
    return %c0_i32, %arg1 : i32, i32
  }
  func.func @transform_3(%arg0: i32, %arg1: i32) -> (i32, i32) {
    %c0_i32 = arith.constant 0 : i32
    return %arg0, %arg1 : i32, i32
  }
}

</mosaic_0001>

<bundles_post_ra>
// kernel: tpu_custom_call.1
= control target key start
LH: loop header
LB: loop body
LE: loop exit
PB: predicated region body
PF: predicated region fallthrough
CT: control target
= control target key end

     0   :  { %8 = vsyncpa [#allocation3], 0  ;;  %s220_s0 = inlined_call_operand.hbm [shape: f32[8,32], index: 0, kind: input, shape index: {}]   ;;  %s221_s1 = inlined_call_operand.hbm [shape: f32[32,128], index: 1, kind: input, shape index: {}]   ;;  %s222_s2 = inlined_call_operand.vmem [shape: f32[1,128], index: 2, kind: input, shape index: {}]   ;;  %s223_s3 = inlined_call_operand.hbm [shape: f32[8,128], index: 3, kind: output, shape index: {}]  }
   0x1   :  { %9 = vsyncpa [#allocation6], 0 }
   0x2   :  { %10 = vsyncpa [#allocation4], 0  ;;  %s16_s14 = sshll.u32 %s220_s0, 4  ;;  %s183_s15 = smov [#allocation2]   ;;  %s17_s14 = int_to_ptr.hbm [resolvable:$true] %s16_s14 }
   0x3   :  { %s18_s16 = sshll.u32 %s183_s15, 4  ;;  %s26_s19 = sshll.u32 %s221_s1, 4  ;;  %s19_s16 = int_to_ptr.vmem [resolvable:$true] %s18_s16  ;;  %s27_s19 = int_to_ptr.hbm [resolvable:$true] %s26_s19 }
   0x4   :  { %21 = dma.hbm_to_vmem [thread:$0]  %s17_s14, 128, %s19_s16, [#allocation3]  }
   0x5   :  { %s184_s20 = smov [#allocation5]   ;;  %s185_s22 = smov 128  }
   0x6   :  { %s28_s21 = sshll.u32 %s184_s20, 4  ;;  %s186_s23 = smov 8   ;;  %s29_s21 = int_to_ptr.vmem [resolvable:$true] %s28_s21 }
   0x7   :  { %34 = dma.hbm_to_vmem [thread:$0]  %s27_s19, 512, %s29_s21, [#allocation6], %s185_s22, %s185_s22, %s186_s23  }
   0x8   :  { %177 = dma.done.wait [#allocation3], 128  }
   0x9   :  { %178 = vsyncadd [#allocation3], 4294967168 }
   0xa   :  { %179 = dma.done.wait [#allocation6], 512  }
   0xb   :  { %180 = vsyncadd [#allocation6], 4294966784  ;;  %v49_v0 = vld [vmem:[#allocation5 + $0x18] sm:$0xff]  ;;  %v48_v1 = vld [vmem:[#allocation5 + $0x10] sm:$0xff]  ;;  %vm54_vm0 = vcmask 261120   ;;  %s187_s24 = smov [#allocation7]  }
   0xc   :  { %70 = vmatpush.msra.mxu0 %v49_v0  ;;  %v47_v2 = vld [vmem:[#allocation5 + $0x8] sm:$0xff]  ;;  %v46_v3 = vld [vmem:[#allocation5] sm:$0xff]  ;;  %v45_v4 = vld [vmem:[#allocation2] sm:$0xff]  ;;  %s85_s25 = sshll.u32 %s187_s24, 4  ;;  %s87_s28 = sshll.u32 %s223_s3, 4  ;;  %s86_s25 = int_to_ptr.vmem [resolvable:$true] %s85_s25  ;;  %s88_s28 = int_to_ptr.hbm [resolvable:$true] %s87_s28 }
   0xd   :  { %v104_v5 = vld [vmem:[%s222_s2] ss:$0 sm:$0xff] }
   0xe   :  { %71 = vmatpush.msra.mxu0 %v48_v1 }
  0x10   :  { %72 = vmatpush.msra.mxu0 %v47_v2 }
  0x12   :  { %73 = vmatpush.msra.mxu0 %v46_v3 }
  0x13   :  { %98 = vmatmul.msk.f32.vlgmr.msra.gmra.mxu0 %vm54_vm0, %v45_v4 }
  0x90   :  { %v75_v6 = vpop.f32.mrf.mxu0 }
  0x91   :  { %v76_v7 = vadd.f32 %v104_v5, %v75_v6 }
  0x93   :  { %v78_v8 = vmax.f32 %v76_v7, 0.0 }
  0x95   :  { %79 = vst [vmem:[#allocation7] sm:$0xff] %v78_v8 }
  0x96   :  { %90 = dma.vmem_to_hbm [thread:$0]  %s86_s25, 128, %s88_s28, [#allocation4]  }
  0x97   :  { %181 = dma.done.wait [#allocation4], 128  }
  0x98   :  { %182 = vsyncadd [#allocation4], 4294967168 }
  0x99   :  { %95 = vsyncpa [#allocation3], 1 }
  0x9a   :  { %96 = vsyncpa [#allocation6], 1 }
  0x9b   :  { %97 = vsyncpa [#allocation4], 1 }

</bundles_post_ra>
